<compile_context>
chip_gen: v7x
topology: tpu7x:2x2x1
jax: 0.10.0
libtpu: 0.0.40
codegen_flags: <defaults>
</compile_context>

<pallas_src>
import functools

import jax
import jax.numpy as jnp
from jax.experimental import pallas as pl
from jax.experimental.pallas import tpu as pltpu

LN_EPS = 1e-5  # torch.nn.LayerNorm default


# ----------------------------------------------------------------------------
# Fused kernel factory
# ----------------------------------------------------------------------------
def _make_fused_mlp_kernel(use_feature_normalization: bool, layer_N: int):
    """Build a fused kernel for the given static config.

    Activations are [features, batch_tile] (batch on the 128-lane axis).
    """

    def _ln_cols(y, g, b):
        # LayerNorm over the feature (sublane) axis, per batch column.
        # One-pass statistics: the mean and the E[x^2] reduces are independent
        # (shorter critical path).  Slightly less robust numerically than the
        # two-pass form, fine for unit-scale / post-ReLU activations; clamp
        # keeps rsqrt safe.
        n = y.shape[0]
        inv_n = 1.0 / n
        m = jnp.sum(y, axis=0, keepdims=True) * inv_n
        ms = jnp.sum(y * y, axis=0, keepdims=True) * inv_n
        v = jnp.maximum(ms - m * m, 0.0)
        return (y - m) * jax.lax.rsqrt(v + LN_EPS) * g + b

    def kernel(*refs):
        it = iter(refs)
        x_ref = next(it)                       # [Din, bm]
        if use_feature_normalization:
            fp_ref = next(it)                  # [Din, 2]  (gamma, beta)
        w1_ref = next(it)                      # [H, Din]
        p1_ref = next(it)                      # [H, 3]    (bias, gamma, beta)
        if layer_N > 0:
            wh_ref = next(it)                  # [L, H, H]
            ph_ref = next(it)                  # [L, H, 3]
        o_ref = next(it)                       # [H, bm]

        x = x_ref[...].astype(jnp.float32)     # [Din, bm]
        if use_feature_normalization:
            fp = fp_ref[...].astype(jnp.float32)
            x = _ln_cols(x, fp[:, 0:1], fp[:, 1:2])

        # fc1: Linear(input_dim -> hidden) + ReLU + LayerNorm
        w1 = w1_ref[...]
        p1 = p1_ref[...].astype(jnp.float32)
        h = jnp.dot(w1, x.astype(w1.dtype),
                    preferred_element_type=jnp.float32)        # [H, bm] f32
        h = jnp.maximum(h + p1[:, 0:1], 0.0)
        h = _ln_cols(h, p1[:, 1:2], p1[:, 2:3])

        if layer_N > 0:
            def layer_step(l, h_in):
                w = wh_ref[l]                                   # [H, H]
                p = ph_ref[l].astype(jnp.float32)               # [H, 3]
                y = jnp.dot(w, h_in.astype(w.dtype),
                            preferred_element_type=jnp.float32)
                y = jnp.maximum(y + p[:, 0:1], 0.0)
                return _ln_cols(y, p[:, 1:2], p[:, 2:3])

            if layer_N <= 16:
                # Static unroll — indices are Python ints, fully visible to
                # the scheduler.
                for l in range(layer_N):
                    h = layer_step(l, h)
            else:
                h = jax.lax.fori_loop(0, layer_N, layer_step, h, unroll=2)

        # Lane-dense store: [H, bm] with the batch tile on the lane axis.
        o_ref[...] = h.astype(o_ref.dtype)

    return kernel


# ----------------------------------------------------------------------------
# Wrapper
# ----------------------------------------------------------------------------
def _round_up(n, m):
    return ((n + m - 1) // m) * m


def _pick_block_cols(B, Din, H, dtype_bytes=4,
                     vmem_budget_bytes=24 * 1024 * 1024, max_cols=8192):
    """Pick the batch-tile width (lane axis of the transposed layout).

    - Small B: one block covering the whole batch (full-dim lane size is
      always layout-legal, even if B is not a multiple of 128).
    - Large B: a multiple of 128, capped by a generous VMEM budget
      (double-buffered I/O blocks + a few f32 intermediates) and capped at
      ~B/2 so the 'parallel' grid axis has >= 2 steps for v7x's 2 TensorCores.
    """
    if B <= 1024:
        return B
    # double-buffered input + output blocks, plus ~4 f32 [H, bm] intermediates
    per_col = dtype_bytes * (2 * (Din + H) + 4 * H)
    cols = min(max_cols, vmem_budget_bytes // max(per_col, 1))
    half = -(-B // 2)                      # ceil(B / 2)
    cols = min(cols, _round_up(half, 128))
    cols = max(128, (cols // 128) * 128)
    return cols


def mlp_base_forward(params, x, use_feature_normalization, *, block_b=None):
    """Fused MLPBase forward: one pallas_call for the whole network.

    x: [B, input_dim].  Returns [B, hidden_size].
    """
    B, Din = x.shape
    w1 = params["fc1"]["w"]                       # [H, Din], torch layout
    H = w1.shape[0]
    layer_N = params["fc_h"]["w"].shape[0] if "fc_h" in params else 0

    bm = _pick_block_cols(B, Din, H) if block_b is None else block_b
    grid = (pl.cdiv(B, bm),)

    # Wrapper-side layout plumbing: batch on the lane axis inside the kernel.
    xT = x.T                                      # [Din, B]

    inputs = [xT]
    in_specs = [pl.BlockSpec((Din, bm), lambda i: (0, i))]

    def _const(shape):
        nd = len(shape)
        # TODO(synk): once pipeline_mode=pl.Buffered(1) is universally
        # supported, single-buffer these constant-index blocks.
        return pl.BlockSpec(shape, lambda i, _nd=nd: (0,) * _nd)

    if use_feature_normalization:
        fp = params["feat_ln"]["pack"]
        inputs.append(fp)
        in_specs.append(_const(fp.shape))

    inputs += [w1, params["fc1"]["pack"]]
    in_specs += [_const(w1.shape), _const(params["fc1"]["pack"].shape)]

    if layer_N > 0:
        wh = params["fc_h"]["w"]
        ph = params["fc_h"]["pack"]
        inputs += [wh, ph]
        in_specs += [_const(wh.shape), _const(ph.shape)]

    kernel = _make_fused_mlp_kernel(use_feature_normalization, layer_N)

    outT = pl.pallas_call(
        kernel,
        out_shape=jax.ShapeDtypeStruct((H, B), x.dtype),
        grid=grid,
        in_specs=in_specs,
        out_specs=pl.BlockSpec((H, bm), lambda i: (0, i)),
        compiler_params=pltpu.CompilerParams(
            dimension_semantics=("parallel",),
            vmem_limit_bytes=32 * 1024 * 1024),
    )(*inputs)

    return outT.T                                 # [B, H]


# ----------------------------------------------------------------------------
# Parameter init (mirrors orthogonal_ with relu gain, zero bias,
# LayerNorm weight=1 / bias=0).  Weights in PyTorch [out, in] layout, bf16 for
# the MXU; bias/gamma/beta packed per stage as f32.
# ----------------------------------------------------------------------------
def _orthogonal(key, out_dim, in_dim, gain):
    rows, cols = max(out_dim, in_dim), min(out_dim, in_dim)
    a = jax.random.normal(key, (rows, cols), dtype=jnp.float32)
    q, r = jnp.linalg.qr(a)
    d = jnp.diag(r)
    q = q * jnp.where(d >= 0, 1.0, -1.0)[None, :]
    w = q if out_dim >= in_dim else q.T            # -> (out_dim, in_dim)
    return gain * w[:out_dim, :in_dim]


def make_mlp_base_params(key, input_dim, hidden_size, layer_N,
                         use_feature_normalization,
                         weight_dtype=jnp.bfloat16, param_dtype=jnp.float32):
    gain = jnp.sqrt(2.0)  # nn.init.calculate_gain('relu')
    params = {}
    if use_feature_normalization:
        feat_gamma = jnp.ones((input_dim,), param_dtype)
        feat_beta = jnp.zeros((input_dim,), param_dtype)
        params["feat_ln"] = dict(
            pack=jnp.stack([feat_gamma, feat_beta], axis=-1))      # [Din, 2]

    keys = jax.random.split(key, layer_N + 1)
    b1 = jnp.zeros((hidden_size,), param_dtype)
    g1 = jnp.ones((hidden_size,), param_dtype)
    be1 = jnp.zeros((hidden_size,), param_dtype)
    params["fc1"] = dict(
        w=_orthogonal(keys[0], hidden_size, input_dim, gain).astype(weight_dtype),
        pack=jnp.stack([b1, g1, be1], axis=-1),                    # [H, 3]
    )
    if layer_N > 0:
        ws = jnp.stack([
            _orthogonal(keys[i + 1], hidden_size, hidden_size, gain)
            for i in range(layer_N)
        ]).astype(weight_dtype)                                    # [L, H, H]
        bh = jnp.zeros((layer_N, hidden_size), param_dtype)
        gh = jnp.ones((layer_N, hidden_size), param_dtype)
        beh = jnp.zeros((layer_N, hidden_size), param_dtype)
        params["fc_h"] = dict(
            w=ws,
            pack=jnp.stack([bh, gh, beh], axis=-1),                # [L, H, 3]
        )
    return params


# ----------------------------------------------------------------------------
# Reference in plain JAX (row layout, torch-style two-pass LayerNorm)
# ----------------------------------------------------------------------------
def _ref_forward(params, x, use_feature_normalization):
    def ln(y, g, b):
        m = jnp.mean(y, axis=-1, keepdims=True)
        v = jnp.mean((y - m) ** 2, axis=-1, keepdims=True)
        return (y - m) / jnp.sqrt(v + LN_EPS) * g + b

    def stage(xx, w, pack):
        p = pack.astype(jnp.float32)
        y = jnp.dot(xx.astype(w.dtype), w.T,
                    preferred_element_type=jnp.float32)
        y = jnp.maximum(y + p[:, 0][None, :], 0.0)
        return ln(y, p[:, 1][None, :], p[:, 2][None, :])

    x = x.astype(jnp.float32)
    if use_feature_normalization:
        fp = params["feat_ln"]["pack"].astype(jnp.float32)
        x = ln(x, fp[:, 0][None, :], fp[:, 1][None, :])
    x = stage(x, params["fc1"]["w"], params["fc1"]["pack"])
    if "fc_h" in params:
        for l in range(params["fc_h"]["w"].shape[0]):
            x = stage(x, params["fc_h"]["w"][l], params["fc_h"]["pack"][l])
    return x


if __name__ == "__main__":
    # args: use_feature_normalization=True, stacked_frames=1 (unused in fwd),
    #       layer_N=2, hidden_size=32
    use_feature_normalization = True
    layer_N = 2
    hidden_size = 32
    input_dim = 24

    key = jax.random.PRNGKey(0)
    k_p, k1, k2 = jax.random.split(key, 3)
    params = make_mlp_base_params(k_p, input_dim, hidden_size, layer_N,
                                  use_feature_normalization)

    # 1) Small single-block case; 2) small multi-block case (forced tile) to
    #    exercise the grid / partial-last-block path.
    cases = (("small", 8, None, k1), ("tiled", 328, 256, k2))
    for name, batch, blk, kx in cases:
        x = jax.random.normal(kx, (batch, input_dim), dtype=jnp.float32)
        out = jax.block_until_ready(
            mlp_base_forward(params, x, use_feature_normalization,
                             block_b=blk))
        ref = _ref_forward(params, x, use_feature_normalization)
        assert out.shape == (batch, hidden_size)
        # bf16 matmul operands (vs f32 reference intermediates) => loose-ish tol
        assert jnp.allclose(out, ref.astype(out.dtype), atol=2e-2, rtol=2e-2), \
            f"mismatch vs reference ({name})"

    print("KERNEL_OK")
</pallas_src>

<mosaic_0001>
module attributes {stable_mosaic.version = 11 : i64} {
  func.func @kernel(%arg0: i32, %arg1: memref<24x8xf32, #tpu.memory_space<vmem>>, %arg2: memref<24x2xf32, #tpu.memory_space<vmem>>, %arg3: memref<32x24xbf16, #tpu.memory_space<vmem>>, %arg4: memref<32x3xf32, #tpu.memory_space<vmem>>, %arg5: memref<2x32x32xbf16, #tpu.memory_space<vmem>>, %arg6: memref<2x32x3xf32, #tpu.memory_space<vmem>>, %arg7: memref<32x8xf32, #tpu.memory_space<vmem>>) attributes {dimension_semantics = [#tpu.dimension_semantics<parallel>], iteration_bounds = array<i64: 1>, scalar_prefetch = 0 : i64, scratch_operands = 0 : i64, tpu.core_type = #tpu.core_type<tc>, window_params = [{transform_indices = @transform_0, window_bounds = array<i64: 24, 8>}, {pipeline_mode = #tpu.pipeline_mode<synchronous>, transform_indices = @transform_1, window_bounds = array<i64: 24, 2>}, {pipeline_mode = #tpu.pipeline_mode<synchronous>, transform_indices = @transform_2, window_bounds = array<i64: 32, 24>}, {pipeline_mode = #tpu.pipeline_mode<synchronous>, transform_indices = @transform_3, window_bounds = array<i64: 32, 3>}, {pipeline_mode = #tpu.pipeline_mode<synchronous>, transform_indices = @transform_4, window_bounds = array<i64: 2, 32, 32>}, {pipeline_mode = #tpu.pipeline_mode<synchronous>, transform_indices = @transform_5, window_bounds = array<i64: 2, 32, 3>}, {transform_indices = @transform_6, window_bounds = array<i64: 32, 8>}]} {
    %c0 = arith.constant 0 : index
    %c0_0 = arith.constant 0 : index
    %0 = vector.load %arg1[%c0, %c0_0] : memref<24x8xf32, #tpu.memory_space<vmem>>, vector<24x8xf32>
    %c0_1 = arith.constant 0 : index
    %c0_2 = arith.constant 0 : index
    %1 = vector.load %arg2[%c0_1, %c0_2] : memref<24x2xf32, #tpu.memory_space<vmem>>, vector<24x2xf32>
    %2 = vector.extract_strided_slice %1 {offsets = [0, 0], sizes = [24, 1], strides = [1, 1]} : vector<24x2xf32> to vector<24x1xf32>
    %3 = vector.extract_strided_slice %1 {offsets = [0, 1], sizes = [24, 1], strides = [1, 1]} : vector<24x2xf32> to vector<24x1xf32>
    %cst = arith.constant dense<0.000000e+00> : vector<8xf32>
    %4 = vector.multi_reduction <add>, %0, %cst [0] : vector<24x8xf32> to vector<8xf32>
    %5 = vector.shape_cast %4 : vector<8xf32> to vector<1x8xf32>
    %cst_3 = arith.constant 0.0416666679 : f32
    %6 = vector.broadcast %cst_3 : f32 to vector<1x8xf32>
    %7 = arith.mulf %5, %6 : vector<1x8xf32>
    %8 = arith.mulf %0, %0 : vector<24x8xf32>
    %cst_4 = arith.constant dense<0.000000e+00> : vector<8xf32>
    %9 = vector.multi_reduction <add>, %8, %cst_4 [0] : vector<24x8xf32> to vector<8xf32>
    %10 = vector.shape_cast %9 : vector<8xf32> to vector<1x8xf32>
    %cst_5 = arith.constant 0.0416666679 : f32
    %11 = vector.broadcast %cst_5 : f32 to vector<1x8xf32>
    %12 = arith.mulf %10, %11 : vector<1x8xf32>
    %13 = arith.mulf %7, %7 : vector<1x8xf32>
    %14 = arith.subf %12, %13 : vector<1x8xf32>
    %cst_6 = arith.constant 0.000000e+00 : f32
    %15 = vector.broadcast %cst_6 : f32 to vector<1x8xf32>
    %16 = arith.maximumf %14, %15 : vector<1x8xf32>
    %17 = vector.broadcast %7 : vector<1x8xf32> to vector<24x8xf32>
    %18 = arith.subf %0, %17 : vector<24x8xf32>
    %cst_7 = arith.constant 9.99999974E-6 : f32
    %19 = vector.broadcast %cst_7 : f32 to vector<1x8xf32>
    %20 = arith.addf %16, %19 : vector<1x8xf32>
    %21 = math.rsqrt %20 : vector<1x8xf32>
    %22 = vector.broadcast %21 : vector<1x8xf32> to vector<24x8xf32>
    %23 = arith.mulf %18, %22 : vector<24x8xf32>
    %24 = vector.broadcast %2 : vector<24x1xf32> to vector<24x8xf32>
    %25 = arith.mulf %23, %24 : vector<24x8xf32>
    %26 = vector.broadcast %3 : vector<24x1xf32> to vector<24x8xf32>
    %27 = arith.addf %25, %26 : vector<24x8xf32>
    %c0_8 = arith.constant 0 : index
    %c0_9 = arith.constant 0 : index
    %28 = vector.load %arg3[%c0_8, %c0_9] : memref<32x24xbf16, #tpu.memory_space<vmem>>, vector<32x24xbf16>
    %c0_10 = arith.constant 0 : index
    %c0_11 = arith.constant 0 : index
    %29 = vector.load %arg4[%c0_10, %c0_11] : memref<32x3xf32, #tpu.memory_space<vmem>>, vector<32x3xf32>
    %30 = arith.truncf %27 : vector<24x8xf32> to vector<24x8xbf16>
    %cst_12 = arith.constant dense<0.000000e+00> : vector<32x8xf32>
    %31 = tpu.matmul %28, %30, %cst_12 {dimension_numbers = #tpu.dot_dimension_numbers<[1], [0], [0], [1], [0, 0, 1, 1], [], []>} : vector<32x24xbf16>, vector<24x8xbf16>, vector<32x8xf32> -> vector<32x8xf32>
    %32 = vector.extract_strided_slice %29 {offsets = [0, 0], sizes = [32, 1], strides = [1, 1]} : vector<32x3xf32> to vector<32x1xf32>
    %33 = vector.broadcast %32 : vector<32x1xf32> to vector<32x8xf32>
    %34 = arith.addf %31, %33 : vector<32x8xf32>
    %cst_13 = arith.constant 0.000000e+00 : f32
    %35 = vector.broadcast %cst_13 : f32 to vector<32x8xf32>
    %36 = arith.maximumf %34, %35 : vector<32x8xf32>
    %37 = vector.extract_strided_slice %29 {offsets = [0, 1], sizes = [32, 1], strides = [1, 1]} : vector<32x3xf32> to vector<32x1xf32>
    %38 = vector.extract_strided_slice %29 {offsets = [0, 2], sizes = [32, 1], strides = [1, 1]} : vector<32x3xf32> to vector<32x1xf32>
    %cst_14 = arith.constant dense<0.000000e+00> : vector<8xf32>
    %39 = vector.multi_reduction <add>, %36, %cst_14 [0] : vector<32x8xf32> to vector<8xf32>
    %40 = vector.shape_cast %39 : vector<8xf32> to vector<1x8xf32>
    %cst_15 = arith.constant 3.125000e-02 : f32
    %41 = vector.broadcast %cst_15 : f32 to vector<1x8xf32>
    %42 = arith.mulf %40, %41 : vector<1x8xf32>
    %43 = arith.mulf %36, %36 : vector<32x8xf32>
    %cst_16 = arith.constant dense<0.000000e+00> : vector<8xf32>
    %44 = vector.multi_reduction <add>, %43, %cst_16 [0] : vector<32x8xf32> to vector<8xf32>
    %45 = vector.shape_cast %44 : vector<8xf32> to vector<1x8xf32>
    %cst_17 = arith.constant 3.125000e-02 : f32
    %46 = vector.broadcast %cst_17 : f32 to vector<1x8xf32>
    %47 = arith.mulf %45, %46 : vector<1x8xf32>
    %48 = arith.mulf %42, %42 : vector<1x8xf32>
    %49 = arith.subf %47, %48 : vector<1x8xf32>
    %cst_18 = arith.constant 0.000000e+00 : f32
    %50 = vector.broadcast %cst_18 : f32 to vector<1x8xf32>
    %51 = arith.maximumf %49, %50 : vector<1x8xf32>
    %52 = vector.broadcast %42 : vector<1x8xf32> to vector<32x8xf32>
    %53 = arith.subf %36, %52 : vector<32x8xf32>
    %cst_19 = arith.constant 9.99999974E-6 : f32
    %54 = vector.broadcast %cst_19 : f32 to vector<1x8xf32>
    %55 = arith.addf %51, %54 : vector<1x8xf32>
    %56 = math.rsqrt %55 : vector<1x8xf32>
    %57 = vector.broadcast %56 : vector<1x8xf32> to vector<32x8xf32>
    %58 = arith.mulf %53, %57 : vector<32x8xf32>
    %59 = vector.broadcast %37 : vector<32x1xf32> to vector<32x8xf32>
    %60 = arith.mulf %58, %59 : vector<32x8xf32>
    %61 = vector.broadcast %38 : vector<32x1xf32> to vector<32x8xf32>
    %62 = arith.addf %60, %61 : vector<32x8xf32>
    %c0_20 = arith.constant 0 : index
    %c0_21 = arith.constant 0 : index
    %c0_22 = arith.constant 0 : index
    %63 = vector.load %arg5[%c0_20, %c0_21, %c0_22] : memref<2x32x32xbf16, #tpu.memory_space<vmem>>, vector<1x32x32xbf16>
    %64 = vector.shape_cast %63 : vector<1x32x32xbf16> to vector<32x32xbf16>
    %c0_23 = arith.constant 0 : index
    %c0_24 = arith.constant 0 : index
    %c0_25 = arith.constant 0 : index
    %65 = vector.load %arg6[%c0_23, %c0_24, %c0_25] : memref<2x32x3xf32, #tpu.memory_space<vmem>>, vector<1x32x3xf32>
    %66 = vector.shape_cast %65 : vector<1x32x3xf32> to vector<32x3xf32>
    %67 = arith.truncf %62 : vector<32x8xf32> to vector<32x8xbf16>
    %cst_26 = arith.constant dense<0.000000e+00> : vector<32x8xf32>
    %68 = tpu.matmul %64, %67, %cst_26 {dimension_numbers = #tpu.dot_dimension_numbers<[1], [0], [0], [1], [0, 0, 1, 1], [], []>} : vector<32x32xbf16>, vector<32x8xbf16>, vector<32x8xf32> -> vector<32x8xf32>
    %69 = vector.extract_strided_slice %66 {offsets = [0, 0], sizes = [32, 1], strides = [1, 1]} : vector<32x3xf32> to vector<32x1xf32>
    %70 = vector.broadcast %69 : vector<32x1xf32> to vector<32x8xf32>
    %71 = arith.addf %68, %70 : vector<32x8xf32>
    %cst_27 = arith.constant 0.000000e+00 : f32
    %72 = vector.broadcast %cst_27 : f32 to vector<32x8xf32>
    %73 = arith.maximumf %71, %72 : vector<32x8xf32>
    %74 = vector.extract_strided_slice %66 {offsets = [0, 1], sizes = [32, 1], strides = [1, 1]} : vector<32x3xf32> to vector<32x1xf32>
    %75 = vector.extract_strided_slice %66 {offsets = [0, 2], sizes = [32, 1], strides = [1, 1]} : vector<32x3xf32> to vector<32x1xf32>
    %cst_28 = arith.constant dense<0.000000e+00> : vector<8xf32>
    %76 = vector.multi_reduction <add>, %73, %cst_28 [0] : vector<32x8xf32> to vector<8xf32>
    %77 = vector.shape_cast %76 : vector<8xf32> to vector<1x8xf32>
    %cst_29 = arith.constant 3.125000e-02 : f32
    %78 = vector.broadcast %cst_29 : f32 to vector<1x8xf32>
    %79 = arith.mulf %77, %78 : vector<1x8xf32>
    %80 = arith.mulf %73, %73 : vector<32x8xf32>
    %cst_30 = arith.constant dense<0.000000e+00> : vector<8xf32>
    %81 = vector.multi_reduction <add>, %80, %cst_30 [0] : vector<32x8xf32> to vector<8xf32>
    %82 = vector.shape_cast %81 : vector<8xf32> to vector<1x8xf32>
    %cst_31 = arith.constant 3.125000e-02 : f32
    %83 = vector.broadcast %cst_31 : f32 to vector<1x8xf32>
    %84 = arith.mulf %82, %83 : vector<1x8xf32>
    %85 = arith.mulf %79, %79 : vector<1x8xf32>
    %86 = arith.subf %84, %85 : vector<1x8xf32>
    %cst_32 = arith.constant 0.000000e+00 : f32
    %87 = vector.broadcast %cst_32 : f32 to vector<1x8xf32>
    %88 = arith.maximumf %86, %87 : vector<1x8xf32>
    %89 = vector.broadcast %79 : vector<1x8xf32> to vector<32x8xf32>
    %90 = arith.subf %73, %89 : vector<32x8xf32>
    %cst_33 = arith.constant 9.99999974E-6 : f32
    %91 = vector.broadcast %cst_33 : f32 to vector<1x8xf32>
    %92 = arith.addf %88, %91 : vector<1x8xf32>
    %93 = math.rsqrt %92 : vector<1x8xf32>
    %94 = vector.broadcast %93 : vector<1x8xf32> to vector<32x8xf32>
    %95 = arith.mulf %90, %94 : vector<32x8xf32>
    %96 = vector.broadcast %74 : vector<32x1xf32> to vector<32x8xf32>
    %97 = arith.mulf %95, %96 : vector<32x8xf32>
    %98 = vector.broadcast %75 : vector<32x1xf32> to vector<32x8xf32>
    %99 = arith.addf %97, %98 : vector<32x8xf32>
    %c1 = arith.constant 1 : index
    %c0_34 = arith.constant 0 : index
    %c0_35 = arith.constant 0 : index
    %100 = vector.load %arg5[%c1, %c0_34, %c0_35] : memref<2x32x32xbf16, #tpu.memory_space<vmem>>, vector<1x32x32xbf16>
    %101 = vector.shape_cast %100 : vector<1x32x32xbf16> to vector<32x32xbf16>
    %c1_36 = arith.constant 1 : index
    %c0_37 = arith.constant 0 : index
    %c0_38 = arith.constant 0 : index
    %102 = vector.load %arg6[%c1_36, %c0_37, %c0_38] : memref<2x32x3xf32, #tpu.memory_space<vmem>>, vector<1x32x3xf32>
    %103 = vector.shape_cast %102 : vector<1x32x3xf32> to vector<32x3xf32>
    %104 = arith.truncf %99 : vector<32x8xf32> to vector<32x8xbf16>
    %cst_39 = arith.constant dense<0.000000e+00> : vector<32x8xf32>
    %105 = tpu.matmul %101, %104, %cst_39 {dimension_numbers = #tpu.dot_dimension_numbers<[1], [0], [0], [1], [0, 0, 1, 1], [], []>} : vector<32x32xbf16>, vector<32x8xbf16>, vector<32x8xf32> -> vector<32x8xf32>
    %106 = vector.extract_strided_slice %103 {offsets = [0, 0], sizes = [32, 1], strides = [1, 1]} : vector<32x3xf32> to vector<32x1xf32>
    %107 = vector.broadcast %106 : vector<32x1xf32> to vector<32x8xf32>
    %108 = arith.addf %105, %107 : vector<32x8xf32>
    %cst_40 = arith.constant 0.000000e+00 : f32
    %109 = vector.broadcast %cst_40 : f32 to vector<32x8xf32>
    %110 = arith.maximumf %108, %109 : vector<32x8xf32>
    %111 = vector.extract_strided_slice %103 {offsets = [0, 1], sizes = [32, 1], strides = [1, 1]} : vector<32x3xf32> to vector<32x1xf32>
    %112 = vector.extract_strided_slice %103 {offsets = [0, 2], sizes = [32, 1], strides = [1, 1]} : vector<32x3xf32> to vector<32x1xf32>
    %cst_41 = arith.constant dense<0.000000e+00> : vector<8xf32>
    %113 = vector.multi_reduction <add>, %110, %cst_41 [0] : vector<32x8xf32> to vector<8xf32>
    %114 = vector.shape_cast %113 : vector<8xf32> to vector<1x8xf32>
    %cst_42 = arith.constant 3.125000e-02 : f32
    %115 = vector.broadcast %cst_42 : f32 to vector<1x8xf32>
    %116 = arith.mulf %114, %115 : vector<1x8xf32>
    %117 = arith.mulf %110, %110 : vector<32x8xf32>
    %cst_43 = arith.constant dense<0.000000e+00> : vector<8xf32>
    %118 = vector.multi_reduction <add>, %117, %cst_43 [0] : vector<32x8xf32> to vector<8xf32>
    %119 = vector.shape_cast %118 : vector<8xf32> to vector<1x8xf32>
    %cst_44 = arith.constant 3.125000e-02 : f32
    %120 = vector.broadcast %cst_44 : f32 to vector<1x8xf32>
    %121 = arith.mulf %119, %120 : vector<1x8xf32>
    %122 = arith.mulf %116, %116 : vector<1x8xf32>
    %123 = arith.subf %121, %122 : vector<1x8xf32>
    %cst_45 = arith.constant 0.000000e+00 : f32
    %124 = vector.broadcast %cst_45 : f32 to vector<1x8xf32>
    %125 = arith.maximumf %123, %124 : vector<1x8xf32>
    %126 = vector.broadcast %116 : vector<1x8xf32> to vector<32x8xf32>
    %127 = arith.subf %110, %126 : vector<32x8xf32>
    %cst_46 = arith.constant 9.99999974E-6 : f32
    %128 = vector.broadcast %cst_46 : f32 to vector<1x8xf32>
    %129 = arith.addf %125, %128 : vector<1x8xf32>
    %130 = math.rsqrt %129 : vector<1x8xf32>
    %131 = vector.broadcast %130 : vector<1x8xf32> to vector<32x8xf32>
    %132 = arith.mulf %127, %131 : vector<32x8xf32>
    %133 = vector.broadcast %111 : vector<32x1xf32> to vector<32x8xf32>
    %134 = arith.mulf %132, %133 : vector<32x8xf32>
    %135 = vector.broadcast %112 : vector<32x1xf32> to vector<32x8xf32>
    %136 = arith.addf %134, %135 : vector<32x8xf32>
    %c0_47 = arith.constant 0 : index
    %c0_48 = arith.constant 0 : index
    %137 = vector.load %arg7[%c0_47, %c0_48] : memref<32x8xf32, #tpu.memory_space<vmem>>, vector<32x8xf32>
    tpu.vector_store %arg7[%c0_47, %c0_48], %136 {strides = array<i32>} : memref<32x8xf32, #tpu.memory_space<vmem>>, vector<32x8xf32>,
    return
  }
  func.func @transform_0(%arg0: i32) -> (i32, i32) {
    %c0_i32 = arith.constant 0 : i32
    %c0_i32_0 = arith.constant 0 : i32
    return %c0_i32, %arg0 : i32, i32
  }
  func.func @transform_1(%arg0: i32) -> (i32, i32) {
    %c0_i32 = arith.constant 0 : i32
    %c0_i32_0 = arith.constant 0 : i32
    %c0_i32_1 = arith.constant 0 : i32
    return %c0_i32, %c0_i32_0 : i32, i32
  }
  func.func @transform_2(%arg0: i32) -> (i32, i32) {
    %c0_i32 = arith.constant 0 : i32
    %c0_i32_0 = arith.constant 0 : i32
    %c0_i32_1 = arith.constant 0 : i32
    return %c0_i32, %c0_i32_0 : i32, i32
  }
  func.func @transform_3(%arg0: i32) -> (i32, i32) {
    %c0_i32 = arith.constant 0 : i32
    %c0_i32_0 = arith.constant 0 : i32
    %c0_i32_1 = arith.constant 0 : i32
    return %c0_i32, %c0_i32_0 : i32, i32
  }
  func.func @transform_4(%arg0: i32) -> (i32, i32, i32) {
    %c0_i32 = arith.constant 0 : i32
    %c0_i32_0 = arith.constant 0 : i32
    %c0_i32_1 = arith.constant 0 : i32
    %c0_i32_2 = arith.constant 0 : i32
    return %c0_i32, %c0_i32_0, %c0_i32_1 : i32, i32, i32
  }
  func.func @transform_5(%arg0: i32) -> (i32, i32, i32) {
    %c0_i32 = arith.constant 0 : i32
    %c0_i32_0 = arith.constant 0 : i32
    %c0_i32_1 = arith.constant 0 : i32
    %c0_i32_2 = arith.constant 0 : i32
    return %c0_i32, %c0_i32_0, %c0_i32_1 : i32, i32, i32
  }
  func.func @transform_6(%arg0: i32) -> (i32, i32) {
    %c0_i32 = arith.constant 0 : i32
    %c0_i32_0 = arith.constant 0 : i32
    return %c0_i32, %arg0 : i32, i32
  }
}

</mosaic_0001>

<bundles_post_ra>
// kernel: tpu_custom_call.1
= control target key start
LH: loop header
LB: loop body
LE: loop exit
PB: predicated region body
PF: predicated region fallthrough
CT: control target
= control target key end

     0   :  { %v767_v0 = vmov 1   ;;  %v768_v1 = vmov 0   ;;  %vm142_vm0 = vcmask 195584   ;;  %v769_v10 = vmov 2   ;;  %s952_s1 = inlined_call_operand.vmem [shape: f32[24,2], index: 1, kind: input, shape index: {}]   ;;  %s953_s3 = inlined_call_operand.vmem [shape: f32[32,3], index: 3, kind: input, shape index: {}]   ;;  %s954_s2 = inlined_call_operand.vmem [shape: bf16[32,24], index: 2, kind: input, shape index: {}]   ;;  %s955_s0 = inlined_call_operand.vmem [shape: f32[24,8], index: 0, kind: input, shape index: {}]   ;;  %s956_s4 = inlined_call_operand.vmem [shape: bf16[2,32,32], index: 4, kind: input, shape index: {}]   ;;  %s957_s5 = inlined_call_operand.vmem [shape: f32[2,32,3], index: 5, kind: input, shape index: {}]   ;;  %s958_s6 = inlined_call_operand.vmem [shape: f32[32,8], index: 6, kind: output, shape index: {}]  }
   0x1   :  { %731 = vset.pattern.permute.xlu1 %v767_v0  ;;  %730 = vset.pattern.permute.xlu0 %v768_v1  ;;  %v27_v2 = vld [vmem:[%s952_s1] sm:$0xff]  ;;  %v28_v3 = vld [vmem:[%s952_s1 + $0x8] sm:$0xff]  ;;  %v29_v4 = vld [vmem:[%s952_s1 + $0x10] sm:$0xff]  ;;  %vm30_vm1 = vcmask 64512   ;;  %vm149_vm2 = vcmask 1043456   ;;  %vm331_vm3 = vcmask 261120  }
   0x2   :  { %88 = vperm.xlu1 %731, %v27_v2   ;;  %71 = vperm.xlu0 %730, %v27_v2   ;;  %v106_v5 = vld [vmem:[%s953_s3] sm:$0xff]  ;;  %v108_v6 = vld [vmem:[%s953_s3 + $0x10] sm:$0xff]  ;;  %v107_v8 = vld [vmem:[%s953_s3 + $0x8] sm:$0xff] }
   0x3   :  { %v753_v7 = vld [vmem:[%s954_s2] sm:$0xff]   ;;  %v109_v9 = vld [vmem:[%s953_s3 + $0x18] sm:$0xff]  ;;  %v25_v12 = vld [vmem:[%s955_s0 + $0x8] sm:$0xff] }
   0x4   :  { %706 = vmatprep.mubr.msk.bf16.mxu0 %vm142_vm0, %v753_v7  ;;  %v24_v11 = vld [vmem:[%s955_s0] sm:$0xff]  ;;  %v32_v14 = vsel %vm30_vm1, %v25_v12, 0.0  ;;  %v44_v16 = vmul.f32 %v25_v12, %v25_v12  ;;  %v26_v17 = vld [vmem:[%s955_s0 + $0x10] sm:$0xff]  ;;  %v296_v7 = vld [vmem:[%s957_s5 + $0x8] sm:$0xff] }
   0x5   :  { %v31_v13 = vsel %vm30_vm1, %v24_v11, 0.0  ;;  %v43_v15 = vmul.f32 %v24_v11, %v24_v11  ;;  %v34_v19 = vsel %vm30_vm1, %v26_v17, 0.0  ;;  %v45_v20 = vmul.f32 %v26_v17, %v26_v17 }
   0x6   :  { %92 = vperm.xlu1 %731, %v28_v3   ;;  %76 = vperm.xlu0 %730, %v28_v3   ;;  %v33_v18 = vadd.f32 %v32_v14, %v31_v13  ;;  %v47_v22 = vsel %vm30_vm1, %v44_v16, 0.0 }
   0x7   :  { %v46_v21 = vsel %vm30_vm1, %v43_v15, 0.0  ;;  %v49_v25 = vsel %vm30_vm1, %v45_v20, 0.0 }
   0x8   :  { %v35_v23 = vadd.f32 %v34_v19, %v33_v18  ;;  %v48_v24 = vadd.f32 %v47_v22, %v46_v21 }
   0xa   :  { %96 = vperm.xlu1 %731, %v29_v4   ;;  %81 = vperm.xlu0 %730, %v29_v4   ;;  %v36_v26 = vrot.slane %v35_v23, 4  ;;  %v50_v27 = vadd.f32 %v49_v25, %v48_v24 }
   0xc   :  { %v37_v28 = vadd.f32 %v36_v26, %v35_v23  ;;  %v51_v29 = vrot.slane %v50_v27, 4 }
   0xe   :  { %114 = vperm.xlu0 %730, %v106_v5   ;;  %732 = vset.pattern.permute.xlu1 %v768_v1  ;;  %v38_v30 = vrot.slane %v37_v28, 2  ;;  %v52_v31 = vadd.f32 %v51_v29, %v50_v27 }
   0xf   :  { %119 = vperm.xlu1 %732, %v107_v8  }
  0x10   :  { %v39_v32 = vadd.f32 %v38_v30, %v37_v28  ;;  %v53_v33 = vrot.slane %v52_v31, 2 }
  0x12   :  { %124 = vperm.xlu0 %730, %v108_v6   ;;  %v40_v34 = vrot.slane %v39_v32, 1  ;;  %v54_v35 = vadd.f32 %v53_v33, %v52_v31 }
  0x13   :  { %129 = vperm.xlu1 %732, %v109_v9  }
  0x14   :  { %v41_v36 = vadd.f32 %v40_v34, %v39_v32  ;;  %v55_v37 = vrot.slane %v54_v35, 1 }
  0x16   :  { %733 = vset.pattern.permute.xlu0 %v767_v0  ;;  %v42_v38 = vmul.f32 0.041666668, %v41_v36  ;;  %v56_v39 = vadd.f32 %v55_v37, %v54_v35 }
  0x17   :  { %252 = vperm.xlu0 %733, %v106_v5   ;;  %734 = vset.pattern.permute.xlu1 %v767_v0 }
  0x18   :  { %256 = vperm.xlu1 %734, %v107_v8   ;;  %v57_v40 = vmul.f32 0.041666668, %v56_v39  ;;  %v58_v41 = vmul.f32 %v42_v38, %v42_v38  ;;  %v61_v45 = vsub.f32 %v24_v11, %v42_v38  ;;  %v62_v47 = vsub.f32 %v25_v12, %v42_v38  ;;  %v298_v11 = vld [vmem:[%s957_s5 + $0x18] sm:$0xff] }
  0x19   :  { %v63_v52 = vsub.f32 %v26_v17, %v42_v38 }
  0x1a   :  { %v59_v42 = vsub.f32 %v57_v40, %v58_v41 }
  0x1b   :  { %736 = vset.pattern.permute.xlu0 %v769_v10 }
  0x1c   :  { %276 = vperm.xlu0 %736, %v107_v8   ;;  %735 = vset.pattern.permute.xlu1 %v769_v10  ;;  %v60_v43 = vmax.f32 %v59_v42, 0.0  ;;  %v295_v8 = vld [vmem:[%s957_s5] sm:$0xff] }
  0x1d   :  { %272 = vperm.xlu1 %735, %v106_v5   ;;  %v754_v5 = vld [vmem:[%s954_s2 + $0x8] sm:$0xff]  }
  0x1e   :  { %v64_v44 = vadd.f32 1e-05, %v60_v43 }
  0x20   :  { %280 = vperm.xlu0 %736, %v108_v6   ;;  %759 = vrsqrt.f32 %v64_v44 }
  0x21   :  { %737 = vset.pattern.permute.xlu1 %v767_v0 }
  0x22   :  { %260 = vperm.xlu1 %737, %v108_v6   ;;  %v755_v6 = vld [vmem:[%s956_s4] sm:$0xff]  }
  0x23   :  { %714 = vmatprep.mubr.msk.bf16.mxu1 %vm331_vm3, %v755_v6 }
  0x24   :  { %739 = vset.pattern.permute.xlu0 %v768_v1 }
  0x25   :  { %303 = vperm.xlu0 %739, %v295_v8  }
  0x26   :  { %264 = vperm.xlu1 %737, %v109_v9  }
  0x29   :  { %318 = vperm.xlu0 %739, %v298_v11  }
  0x2a   :  { %738 = vset.pattern.permute.xlu1 %v769_v10  ;;  %v760_v46 = vpop.eup %759 }
  0x2b   :  { %284 = vperm.xlu1 %738, %v109_v9   ;;  %v66_v48 = vmul.f32 %v760_v46, %v61_v45  ;;  %v67_v51 = vmul.f32 %v760_v46, %v62_v47  ;;  %v68_v57 = vmul.f32 %v760_v46, %v63_v52  ;;  %v297_v9 = vld [vmem:[%s957_s5 + $0x10] sm:$0xff] }
  0x2d   :  { %742 = vset.pattern.permute.xlu0 %v767_v0 }
  0x2e   :  { %441 = vperm.xlu0 %742, %v296_v7  }
  0x2f   :  { %740 = vset.pattern.permute.xlu1 %v768_v1 }
  0x30   :  { %308 = vperm.xlu1 %740, %v296_v7  }
  0x32   :  { %445 = vperm.xlu0 %742, %v297_v9  }
  0x34   :  { %313 = vperm.xlu1 %740, %v297_v9  }
  0x36   :  { %745 = vset.pattern.permute.xlu0 %v769_v10 }
  0x37   :  { %465 = vperm.xlu0 %745, %v297_v9  }
  0x38   :  { %741 = vset.pattern.permute.xlu1 %v767_v0 }
  0x39   :  { %437 = vperm.xlu1 %741, %v295_v8  }
  0x3b   :  { %748 = vset.pattern.permute.xlu0 %v768_v1 }
  0x3d   :  { %743 = vset.pattern.permute.xlu1 %v769_v10 }
  0x3e   :  { %457 = vperm.xlu1 %743, %v295_v8  }
  0x42   :  { %461 = vperm.xlu1 %743, %v296_v7  }
  0x46   :  { %744 = vset.pattern.permute.xlu1 %v767_v0 }
  0x47   :  { %449 = vperm.xlu1 %744, %v298_v11  }
  0x4b   :  { %746 = vset.pattern.permute.xlu1 %v769_v10 }
  0x4c   :  { %469 = vperm.xlu1 %746, %v298_v11  }
  0x50   :  { %747 = vset.pattern.permute.xlu1 %v768_v1 }
  0x81   :  { %v89_v49 = vpop.permute.xlu1 %88  ;;  %v72_v50 = vpop.permute.xlu0 %71 }
  0x82   :  { %v84_v53 = vmul.f32 %v72_v50, %v66_v48 }
  0x84   :  { %v99_v58 = vadd.f32 %v89_v49, %v84_v53 }
  0x85   :  { %v93_v54 = vpop.permute.xlu1 %92  ;;  %v77_v55 = vpop.permute.xlu0 %76 }
  0x86   :  { %v85_v56 = vmul.f32 %v77_v55, %v67_v51 }
  0x88   :  { %v100_v59 = vadd.f32 %v93_v54, %v85_v56 }
  0x89   :  { %v82_v60 = vpop.permute.xlu0 %81  ;;  %v97_v63 = vpop.permute.xlu1 %96 }
  0x8a   :  { %v86_v61 = vmul.f32 %v82_v60, %v68_v57  ;;  %v110_v62 = vpack.c.bf16 %v100_v59, %v99_v58 }
  0x8c   :  { %v101_v2 = vadd.f32 %v97_v63, %v86_v61  ;;  %702 = vmatprep.subr.bf16.mxu0 %v110_v62 }
  0x8d   :  { %703 = vmatpush3.bf16.msra.mxu0 %v110_v62  ;;  %v115_v12 = vpop.permute.xlu0 %114 }
  0x8e   :  { %v111_v3 = vpack.c.bf16 %v101_v2, %v101_v2  ;;  %v120_v13 = vpop.permute.xlu1 %119 }
  0x90   :  { %726 = vmatprep.subr.msk.bf16.mxu0 %vm149_vm2, %v111_v3  ;;  %v151_v4 = vsel %vm149_vm2, %v111_v3, 0 }
  0x91   :  { %705 = vmatpush3.bf16.msra.mxu0 %v151_v4  ;;  %v125_v14 = vpop.permute.xlu0 %124 }
  0x92   :  { %v130_v16 = vpop.permute.xlu1 %129 }
  0x94   :  { %707 = vmatmul.mubr.msk.bf16.vlgmr.msra.gmra.mrb[0].mxu0 %vm142_vm0, %v754_v5 }
  0x96   :  { %v253_v8 = vpop.permute.xlu0 %252 }
  0x97   :  { %v257_v56 = vpop.permute.xlu1 %256 }
  0x9b   :  { %v277_v11 = vpop.permute.xlu0 %276 }
  0x9c   :  { %v273_v4 = vpop.permute.xlu1 %272 }
  0xa1   :  { %v261_v7 = vpop.permute.xlu1 %260 }
  0xa5   :  { %v265_v9 = vpop.permute.xlu1 %264 }
 0x167   :  { %v708_v15 = vpop.f32.mrb[0].mxu0 }
 0x168   :  { %v196_v17 = vadd.f32 %v708_v15, %v125_v14  ;;  %v187_v18 = vpop.f32.mrb[1].mxu0 }
 0x169   :  { %v188_v19 = vadd.f32 %v187_v18, %v115_v12  ;;  %v709_v20 = vpop.f32.mrb[2].mxu0  ;;  %v281_v18 = vpop.permute.xlu0 %280 }
 0x16a   :  { %v199_v21 = vadd.f32 %v709_v20, %v130_v16  ;;  %v190_v22 = vpop.f32.mrb[3].mxu0  ;;  %v204_v23 = vmax.f32 %v196_v17, 0.0  ;;  %v285_v17 = vpop.permute.xlu1 %284 }
 0x16b   :  { %v202_v24 = vmax.f32 %v188_v19, 0.0  ;;  %v191_v25 = vadd.f32 %v190_v22, %v120_v13 }
 0x16c   :  { %v205_v27 = vmax.f32 %v199_v21, 0.0  ;;  %v222_v29 = vmul.f32 %v204_v23, %v204_v23  ;;  %v209_v33 = vsel %vm30_vm1, %v204_v23, 0.0 }
 0x16d   :  { %v220_v26 = vmul.f32 %v202_v24, %v202_v24  ;;  %v203_v28 = vmax.f32 %v191_v25, 0.0  ;;  %v206_v1 = vsel %vm30_vm1, %v202_v24, 0.0 }
 0x16e   :  { %v223_v35 = vmul.f32 %v205_v27, %v205_v27  ;;  %v227_v39 = vsel %vm30_vm1, %v222_v29, 0.0  ;;  %v211_v40 = vsel %vm30_vm1, %v205_v27, 0.0  ;;  %v756_v29 = vld [vmem:[%s956_s4 + $0x8] sm:$0xff]  }
 0x16f   :  { %v207_v30 = vsel %vm30_vm1, %v203_v28, 0.0  ;;  %v221_v31 = vmul.f32 %v203_v28, %v203_v28  ;;  %v224_v34 = vsel %vm30_vm1, %v220_v26, 0.0 }
 0x170   :  { %v208_v32 = vadd.f32 %v207_v30, %v206_v1  ;;  %v229_v43 = vsel %vm30_vm1, %v223_v35, 0.0  ;;  %v757_v1 = vld [vmem:[%s956_s4 + $0x10] sm:$0xff]   ;;  %v682_v30 = vld [vmem:[%s957_s5 + $0x20] sm:$0xff]  ;;  %v304_v35 = vpop.permute.xlu0 %303 }
 0x171   :  { %v225_v36 = vsel %vm30_vm1, %v221_v31, 0.0  ;;  %722 = vmatprep.mubr.msk.bf16.mxu0 %vm331_vm3, %v757_v1  ;;  %490 = vperm.xlu1 %747, %v682_v30   ;;  %v683_v31 = vld [vmem:[%s957_s5 + $0x28] sm:$0xff] }
 0x172   :  { %v210_v37 = vadd.f32 %v209_v33, %v208_v32  ;;  %v226_v38 = vadd.f32 %v225_v36, %v224_v34  ;;  %v684_v32 = vld [vmem:[%s957_s5 + $0x30] sm:$0xff]  ;;  %495 = vperm.xlu0 %748, %v683_v31   ;;  %v685_v33 = vld [vmem:[%s957_s5 + $0x38] sm:$0xff]  ;;  %v309_v34 = vpop.permute.xlu1 %308 }
 0x174   :  { %v212_v41 = vadd.f32 %v211_v40, %v210_v37  ;;  %v228_v42 = vadd.f32 %v227_v39, %v226_v38  ;;  %v319_v38 = vpop.permute.xlu0 %318 }
 0x175   :  { %500 = vperm.xlu1 %747, %v684_v32  }
 0x176   :  { %v213_v44 = vrot.slane %v212_v41, 4  ;;  %v230_v45 = vadd.f32 %v229_v43, %v228_v42  ;;  %749 = vset.pattern.permute.xlu0 %v767_v0  ;;  %v314_v36 = vpop.permute.xlu1 %313 }
 0x177   :  { %623 = vperm.xlu0 %749, %v682_v30  }
 0x178   :  { %v214_v46 = vadd.f32 %v213_v44, %v212_v41  ;;  %v231_v47 = vrot.slane %v230_v45, 4 }
 0x179   :  { %505 = vperm.xlu1 %747, %v685_v33  }
 0x17a   :  { %v215_v48 = vrot.slane %v214_v46, 2  ;;  %v232_v49 = vadd.f32 %v231_v47, %v230_v45 }
 0x17b   :  { %635 = vperm.xlu0 %749, %v685_v33  }
 0x17c   :  { %v216_v50 = vadd.f32 %v215_v48, %v214_v46  ;;  %v233_v51 = vrot.slane %v232_v49, 2 }
 0x17d   :  { %750 = vset.pattern.permute.xlu1 %v767_v0 }
 0x17e   :  { %v217_v52 = vrot.slane %v216_v50, 1  ;;  %v234_v53 = vadd.f32 %v233_v51, %v232_v49  ;;  %627 = vperm.xlu1 %750, %v683_v31  }
 0x17f   :  { %752 = vset.pattern.permute.xlu0 %v769_v10 }
 0x180   :  { %v218_v54 = vadd.f32 %v217_v52, %v216_v50  ;;  %v235_v55 = vrot.slane %v234_v53, 1  ;;  %647 = vperm.xlu0 %752, %v683_v31  }
 0x182   :  { %v236_v57 = vadd.f32 %v235_v55, %v234_v53  ;;  %v219_v58 = vmul.f32 0.03125, %v218_v54  ;;  %631 = vperm.xlu1 %750, %v684_v32  }
 0x184   :  { %v237_v59 = vmul.f32 0.03125, %v236_v57  ;;  %v238_v60 = vmul.f32 %v219_v58, %v219_v58  ;;  %v242_v61 = vsub.f32 %v203_v28, %v219_v58  ;;  %v243_v62 = vsub.f32 %v204_v23, %v219_v58 }
 0x185   :  { %v241_v63 = vsub.f32 %v202_v24, %v219_v58  ;;  %v244_v2 = vsub.f32 %v205_v27, %v219_v58 }
 0x186   :  { %v239_v3 = vsub.f32 %v237_v59, %v238_v60  ;;  %751 = vset.pattern.permute.xlu1 %v769_v10 }
 0x187   :  { %643 = vperm.xlu1 %751, %v682_v30  }
 0x188   :  { %v240_v5 = vmax.f32 %v239_v3, 0.0 }
 0x18a   :  { %v245_v6 = vadd.f32 1e-05, %v240_v5 }
 0x18b   :  { %651 = vperm.xlu1 %751, %v684_v32  }
 0x18c   :  { %761 = vrsqrt.f32 %v245_v6 }
 0x18f   :  { %655 = vperm.xlu1 %751, %v685_v33  }
 0x196   :  { %v762_v12 = vpop.eup %761 }
 0x197   :  { %v248_v13 = vmul.f32 %v762_v12, %v242_v61  ;;  %v249_v14 = vmul.f32 %v762_v12, %v243_v62  ;;  %v247_v15 = vmul.f32 %v762_v12, %v241_v63  ;;  %v250_v16 = vmul.f32 %v762_v12, %v244_v2 }
 0x199   :  { %v268_v19 = vmul.f32 %v257_v56, %v248_v13  ;;  %v269_v20 = vmul.f32 %v261_v7, %v249_v14  ;;  %v267_v21 = vmul.f32 %v253_v8, %v247_v15  ;;  %v270_v22 = vmul.f32 %v265_v9, %v250_v16 }
 0x19b   :  { %v287_v23 = vadd.f32 %v273_v4, %v267_v21  ;;  %v288_v24 = vadd.f32 %v277_v11, %v268_v19  ;;  %v290_v25 = vadd.f32 %v285_v17, %v270_v22  ;;  %v289_v26 = vadd.f32 %v281_v18, %v269_v20  ;;  %v438_v17 = vpop.permute.xlu1 %437 }
 0x19d   :  { %v300_v27 = vpack.c.bf16 %v290_v25, %v289_v26  ;;  %v299_v28 = vpack.c.bf16 %v288_v24, %v287_v23 }
 0x19f   :  { %710 = vmatprep.subr.bf16.mxu1 %v299_v28 }
 0x1a0   :  { %711 = vmatpush3.bf16.msra.mxu1 %v299_v28 }
 0x1a1   :  { %712 = vmatprep.subr.bf16.mxu1 %v300_v27 }
 0x1a4   :  { %713 = vmatpush3.bf16.msra.mxu1 %v300_v27  ;;  %v458_v27 = vpop.permute.xlu1 %457 }
 0x1a7   :  { %715 = vmatmul.mubr.msk.bf16.vlgmr.msra.gmra.mrb[0].mxu1 %vm331_vm3, %v756_v29  ;;  %v442_v29 = vpop.permute.xlu0 %441 }
 0x1a8   :  { %v462_v1 = vpop.permute.xlu1 %461 }
 0x1ab   :  { %v446_v30 = vpop.permute.xlu0 %445 }
 0x1ac   :  { %v450_v31 = vpop.permute.xlu1 %449 }
 0x27a   :  { %v716_v37 = vpop.f32.mrb[0].mxu1 }
 0x27b   :  { %v381_v39 = vadd.f32 %v716_v37, %v314_v36  ;;  %v372_v40 = vpop.f32.mrb[1].mxu1  ;;  %v470_v37 = vpop.permute.xlu1 %469 }
 0x27c   :  { %v373_v41 = vadd.f32 %v372_v40, %v304_v35  ;;  %v717_v42 = vpop.f32.mrb[2].mxu1 }
 0x27d   :  { %v384_v0 = vadd.f32 %v717_v42, %v319_v38  ;;  %v375_v43 = vpop.f32.mrb[3].mxu1  ;;  %v389_v44 = vmax.f32 %v381_v39, 0.0  ;;  %v466_v38 = vpop.permute.xlu0 %465 }
 0x27e   :  { %v387_v45 = vmax.f32 %v373_v41, 0.0  ;;  %v376_v46 = vadd.f32 %v375_v43, %v309_v34 }
 0x27f   :  { %v390_v48 = vmax.f32 %v384_v0, 0.0  ;;  %v407_v49 = vmul.f32 %v389_v44, %v389_v44  ;;  %v394_v54 = vsel %vm30_vm1, %v389_v44, 0.0 }
 0x280   :  { %v405_v47 = vmul.f32 %v387_v45, %v387_v45  ;;  %v388_v10 = vmax.f32 %v376_v46, 0.0  ;;  %v391_v50 = vsel %vm30_vm1, %v387_v45, 0.0 }
 0x281   :  { %v408_v56 = vmul.f32 %v390_v48, %v390_v48  ;;  %v412_v60 = vsel %vm30_vm1, %v407_v49, 0.0  ;;  %v396_v61 = vsel %vm30_vm1, %v390_v48, 0.0 }
 0x282   :  { %v392_v51 = vsel %vm30_vm1, %v388_v10, 0.0  ;;  %v406_v52 = vmul.f32 %v388_v10, %v388_v10  ;;  %v409_v55 = vsel %vm30_vm1, %v405_v47, 0.0 }
 0x283   :  { %v393_v53 = vadd.f32 %v392_v51, %v391_v50  ;;  %v414_v2 = vsel %vm30_vm1, %v408_v56, 0.0 }
 0x284   :  { %v410_v57 = vsel %vm30_vm1, %v406_v52, 0.0 }
 0x285   :  { %v395_v58 = vadd.f32 %v394_v54, %v393_v53  ;;  %v411_v59 = vadd.f32 %v410_v57, %v409_v55  ;;  %v496_v53 = vpop.permute.xlu0 %495 }
 0x287   :  { %v397_v62 = vadd.f32 %v396_v61, %v395_v58  ;;  %v413_v63 = vadd.f32 %v412_v60, %v411_v59 }
 0x289   :  { %v398_v3 = vrot.slane %v397_v62, 4  ;;  %v415_v4 = vadd.f32 %v414_v2, %v413_v63 }
 0x28b   :  { %v399_v5 = vadd.f32 %v398_v3, %v397_v62  ;;  %v416_v6 = vrot.slane %v415_v4, 4 }
 0x28d   :  { %v400_v7 = vrot.slane %v399_v5, 2  ;;  %v417_v8 = vadd.f32 %v416_v6, %v415_v4 }
 0x28f   :  { %v401_v9 = vadd.f32 %v400_v7, %v399_v5  ;;  %v418_v11 = vrot.slane %v417_v8, 2 }
 0x291   :  { %v402_v12 = vrot.slane %v401_v9, 1  ;;  %v419_v13 = vadd.f32 %v418_v11, %v417_v8 }
 0x293   :  { %v403_v14 = vadd.f32 %v402_v12, %v401_v9  ;;  %v420_v15 = vrot.slane %v419_v13, 1 }
 0x295   :  { %v421_v16 = vadd.f32 %v420_v15, %v419_v13  ;;  %v404_v18 = vmul.f32 0.03125, %v403_v14 }
 0x297   :  { %v422_v19 = vmul.f32 0.03125, %v421_v16  ;;  %v423_v20 = vmul.f32 %v404_v18, %v404_v18  ;;  %v426_v21 = vsub.f32 %v387_v45, %v404_v18  ;;  %v427_v22 = vsub.f32 %v388_v10, %v404_v18  ;;  %v491_v10 = vpop.permute.xlu1 %490 }
 0x298   :  { %v428_v23 = vsub.f32 %v389_v44, %v404_v18  ;;  %v429_v24 = vsub.f32 %v390_v48, %v404_v18  ;;  %v758_v48 = vld [vmem:[%s956_s4 + $0x18] sm:$0xff]  }
 0x299   :  { %v424_v25 = vsub.f32 %v422_v19, %v423_v20 }
 0x29b   :  { %v425_v26 = vmax.f32 %v424_v25, 0.0  ;;  %v501_v49 = vpop.permute.xlu1 %500 }
 0x29d   :  { %v430_v28 = vadd.f32 1e-05, %v425_v26 }
 0x29f   :  { %763 = vrsqrt.f32 %v430_v28  ;;  %v506_v54 = vpop.permute.xlu1 %505 }
 0x2a9   :  { %v764_v32 = vpop.eup %763 }
 0x2aa   :  { %v432_v33 = vmul.f32 %v764_v32, %v426_v21  ;;  %v433_v34 = vmul.f32 %v764_v32, %v427_v22  ;;  %v434_v35 = vmul.f32 %v764_v32, %v428_v23  ;;  %v435_v36 = vmul.f32 %v764_v32, %v429_v24  ;;  %v628_v32 = vpop.permute.xlu1 %627 }
 0x2ac   :  { %v452_v39 = vmul.f32 %v438_v17, %v432_v33  ;;  %v453_v40 = vmul.f32 %v442_v29, %v433_v34  ;;  %v454_v41 = vmul.f32 %v446_v30, %v434_v35  ;;  %v455_v42 = vmul.f32 %v450_v31, %v435_v36 }
 0x2ae   :  { %v472_v0 = vadd.f32 %v458_v27, %v452_v39  ;;  %v473_v43 = vadd.f32 %v462_v1, %v453_v40  ;;  %v475_v44 = vadd.f32 %v470_v37, %v455_v42  ;;  %v474_v45 = vadd.f32 %v466_v38, %v454_v41  ;;  %v632_v42 = vpop.permute.xlu1 %631 }
 0x2b0   :  { %v487_v46 = vpack.c.bf16 %v475_v44, %v474_v45  ;;  %v486_v47 = vpack.c.bf16 %v473_v43, %v472_v0  ;;  %v624_v44 = vpop.permute.xlu0 %623 }
 0x2b2   :  { %718 = vmatprep.subr.bf16.mxu0 %v486_v47  ;;  %v644_v43 = vpop.permute.xlu1 %643 }
 0x2b3   :  { %719 = vmatpush3.bf16.msra.mxu0 %v486_v47 }
 0x2b4   :  { %720 = vmatprep.subr.bf16.mxu0 %v487_v46 }
 0x2b6   :  { %v652_v45 = vpop.permute.xlu1 %651 }
 0x2b7   :  { %721 = vmatpush3.bf16.msra.mxu0 %v487_v46  ;;  %v636_v46 = vpop.permute.xlu0 %635 }
 0x2ba   :  { %723 = vmatmul.mubr.msk.bf16.vlgmr.msra.gmra.mrb[4].mxu0 %vm331_vm3, %v758_v48 }
 0x38d   :  { %v724_v50 = vpop.f32.mrb[4].mxu0 }
 0x38e   :  { %v567_v51 = vadd.f32 %v724_v50, %v501_v49  ;;  %v558_v52 = vpop.f32.mrb[5].mxu0 }
 0x38f   :  { %v559_v55 = vadd.f32 %v558_v52, %v491_v10  ;;  %v725_v56 = vpop.f32.mrb[6].mxu0 }
 0x390   :  { %v570_v57 = vadd.f32 %v725_v56, %v506_v54  ;;  %v561_v58 = vpop.f32.mrb[7].mxu0  ;;  %v575_v59 = vmax.f32 %v567_v51, 0.0  ;;  %v648_v51 = vpop.permute.xlu0 %647 }
 0x391   :  { %v573_v60 = vmax.f32 %v559_v55, 0.0  ;;  %v562_v61 = vadd.f32 %v561_v58, %v496_v53  ;;  %v656_v56 = vpop.permute.xlu1 %655 }
 0x392   :  { %v576_v63 = vmax.f32 %v570_v57, 0.0  ;;  %v593_v3 = vmul.f32 %v575_v59, %v575_v59  ;;  %v580_v8 = vsel %vm30_vm1, %v575_v59, 0.0 }
 0x393   :  { %v591_v62 = vmul.f32 %v573_v60, %v573_v60  ;;  %v574_v2 = vmax.f32 %v562_v61, 0.0  ;;  %v577_v4 = vsel %vm30_vm1, %v573_v60, 0.0 }
 0x394   :  { %v594_v11 = vmul.f32 %v576_v63, %v576_v63  ;;  %v598_v15 = vsel %vm30_vm1, %v593_v3, 0.0  ;;  %v582_v16 = vsel %vm30_vm1, %v576_v63, 0.0 }
 0x395   :  { %v578_v5 = vsel %vm30_vm1, %v574_v2, 0.0  ;;  %v592_v6 = vmul.f32 %v574_v2, %v574_v2  ;;  %v595_v9 = vsel %vm30_vm1, %v591_v62, 0.0 }
 0x396   :  { %v579_v7 = vadd.f32 %v578_v5, %v577_v4  ;;  %v600_v19 = vsel %vm30_vm1, %v594_v11, 0.0 }
 0x397   :  { %v596_v12 = vsel %vm30_vm1, %v592_v6, 0.0 }
 0x398   :  { %v581_v13 = vadd.f32 %v580_v8, %v579_v7  ;;  %v597_v14 = vadd.f32 %v596_v12, %v595_v9 }
 0x39a   :  { %v583_v17 = vadd.f32 %v582_v16, %v581_v13  ;;  %v599_v18 = vadd.f32 %v598_v15, %v597_v14 }
 0x39c   :  { %v584_v20 = vrot.slane %v583_v17, 4  ;;  %v601_v21 = vadd.f32 %v600_v19, %v599_v18 }
 0x39e   :  { %v585_v22 = vadd.f32 %v584_v20, %v583_v17  ;;  %v602_v23 = vrot.slane %v601_v21, 4 }
 0x3a0   :  { %v586_v24 = vrot.slane %v585_v22, 2  ;;  %v603_v25 = vadd.f32 %v602_v23, %v601_v21 }
 0x3a2   :  { %v587_v26 = vadd.f32 %v586_v24, %v585_v22  ;;  %v604_v27 = vrot.slane %v603_v25, 2 }
 0x3a4   :  { %v588_v28 = vrot.slane %v587_v26, 1  ;;  %v605_v29 = vadd.f32 %v604_v27, %v603_v25 }
 0x3a6   :  { %v589_v1 = vadd.f32 %v588_v28, %v587_v26  ;;  %v606_v30 = vrot.slane %v605_v29, 1 }
 0x3a8   :  { %v607_v31 = vadd.f32 %v606_v30, %v605_v29  ;;  %v590_v33 = vmul.f32 0.03125, %v589_v1 }
 0x3aa   :  { %v608_v34 = vmul.f32 0.03125, %v607_v31  ;;  %v609_v35 = vmul.f32 %v590_v33, %v590_v33  ;;  %v613_v36 = vsub.f32 %v574_v2, %v590_v33  ;;  %v614_v37 = vsub.f32 %v575_v59, %v590_v33 }
 0x3ab   :  { %v612_v38 = vsub.f32 %v573_v60, %v590_v33  ;;  %v615_v39 = vsub.f32 %v576_v63, %v590_v33 }
 0x3ac   :  { %v610_v40 = vsub.f32 %v608_v34, %v609_v35 }
 0x3ae   :  { %v611_v41 = vmax.f32 %v610_v40, 0.0 }
 0x3b0   :  { %v616_v0 = vadd.f32 1e-05, %v611_v41 }
 0x3b2   :  { %765 = vrsqrt.f32 %v616_v0 }
 0x3bc   :  { %v766_v47 = vpop.eup %765 }
 0x3bd   :  { %v619_v48 = vmul.f32 %v766_v47, %v613_v36  ;;  %v620_v10 = vmul.f32 %v766_v47, %v614_v37  ;;  %v618_v49 = vmul.f32 %v766_v47, %v612_v38  ;;  %v621_v50 = vmul.f32 %v766_v47, %v615_v39 }
 0x3bf   :  { %v639_v52 = vmul.f32 %v628_v32, %v619_v48  ;;  %v640_v53 = vmul.f32 %v632_v42, %v620_v10  ;;  %v638_v54 = vmul.f32 %v624_v44, %v618_v49  ;;  %v641_v55 = vmul.f32 %v636_v46, %v621_v50 }
 0x3c1   :  { %v658_v57 = vadd.f32 %v644_v43, %v638_v54  ;;  %v660_v58 = vadd.f32 %v652_v45, %v640_v53  ;;  %v661_v59 = vadd.f32 %v656_v56, %v641_v55  ;;  %v659_v60 = vadd.f32 %v648_v51, %v639_v52 }
 0x3c3   :  { %662 = vst.msk [vmem:[%s958_s6] sm:$0xff] %vm30_vm1, %v658_v57  ;;  %664 = vst.msk [vmem:[%s958_s6 + $0x10] sm:$0xff] %vm30_vm1, %v660_v58 }
 0x3c4   :  { %665 = vst.msk [vmem:[%s958_s6 + $0x18] sm:$0xff] %vm30_vm1, %v661_v59  ;;  %663 = vst.msk [vmem:[%s958_s6 + $0x8] sm:$0xff] %vm30_vm1, %v659_v60 }

</bundles_post_ra>
